<compile_context>
chip_gen: v5e
topology: v5e:2x2
jax: 0.10.0
libtpu: 0.0.40
codegen_flags: <defaults>
</compile_context>

<pallas_src>
import math
import jax
import jax.numpy as jnp
from jax.experimental import pallas as pl
from jax.experimental.pallas import tpu as pltpu

# ---- small config (consistent with Kelso_Config) ----
BSZ, B_N = 2, 8
ROWS = BSZ * B_N
HIDDEN = 32
NUM_HEADS = 2
HEAD_DIM = 16                 # num_heads * head_dim == hidden
NUM_LAYERS = 2
INTER = 64                    # mlp_intermediate_size
VOCAB = 50
POS_BASE = 10000.0
LN_EPS = 1e-5
NEG = -1e9                    # safe additive-mask sentinel (float32-min overflows when summed)
DECODER_MASK = True


def _layernorm(x, w, b):
    mu = jnp.mean(x, axis=-1, keepdims=True)
    var = jnp.mean((x - mu) ** 2, axis=-1, keepdims=True)
    return (x - mu) * jax.lax.rsqrt(var + LN_EPS) * w + b


def _rope_full(x, cos, sin):
    # x: (rows, HIDDEN) with heads packed along lanes; cos/sin pre-tiled to HIDDEN.
    half = HEAD_DIM // 2
    parts = []
    for h in range(NUM_HEADS):              # static per-head rotate-half slices
        lo = h * HEAD_DIM
        parts.append(-x[:, lo + half:lo + HEAD_DIM])
        parts.append(x[:, lo:lo + half])
    rotated = jnp.concatenate(parts, axis=-1)
    return x * cos + rotated * sin


# ---------------- fused whole-stack kernel ----------------

def kelso_stack_kernel(x_ref, cos_ref, sin_ref, mask_ref,
                       wqkv_ref, wo_ref, lnp_w_ref, lnp_b_ref,
                       wgu_ref, wd_ref, lnq_w_ref, lnq_b_ref,
                       out_ref, acc_ref):
    layer = pl.program_id(0)

    @pl.when(layer == 0)
    def _():
        acc_ref[...] = x_ref[...]            # load embeddings into the resident slab

    x = acc_ref[...]                          # (ROWS, HIDDEN), resident across layers
    cos = cos_ref[...]                        # (ROWS, HIDDEN)
    sin = sin_ref[...]
    mask = mask_ref[...]                      # (ROWS, ROWS) block-diagonal + pad + causal

    # fused q/k/v projection: one (ROWS,H) x (H,3H) MXU push
    qkv = jnp.dot(x, wqkv_ref[0], preferred_element_type=jnp.float32)
    q = _rope_full(qkv[:, :HIDDEN], cos, sin)
    k = _rope_full(qkv[:, HIDDEN:2 * HIDDEN], cos, sin)
    v = qkv[:, 2 * HIDDEN:]

    scale = 1.0 / math.sqrt(HEAD_DIM)
    oh_parts = []
    for h in range(NUM_HEADS):                # static unroll over heads
        lo, hi = h * HEAD_DIM, (h + 1) * HEAD_DIM
        s = jnp.dot(q[:, lo:hi], k[:, lo:hi].T,
                    preferred_element_type=jnp.float32) * scale + mask
        m = jnp.max(s, axis=-1, keepdims=True)
        e = jnp.exp(s - m)
        p = e * pl.reciprocal(jnp.sum(e, axis=-1, keepdims=True), approx=False)
        oh_parts.append(jnp.dot(p, v[:, lo:hi], preferred_element_type=jnp.float32))
    attn = jnp.concatenate(oh_parts, axis=-1)            # (ROWS, HIDDEN)
    x = x + jnp.dot(attn, wo_ref[0], preferred_element_type=jnp.float32)

    # pre-norm + fused gate/up SwiGLU MLP + residual + post-norm
    h1 = _layernorm(x, lnp_w_ref[0], lnp_b_ref[0])
    gu = jnp.dot(h1, wgu_ref[0], preferred_element_type=jnp.float32)   # (ROWS, 2*INTER)
    g = gu[:, :INTER]
    u = gu[:, INTER:]
    mlp = jnp.dot((g * jax.nn.sigmoid(g)) * u, wd_ref[0],
                  preferred_element_type=jnp.float32)
    x = x + mlp
    x = _layernorm(x, lnq_w_ref[0], lnq_b_ref[0])

    acc_ref[...] = x                          # keep activations resident in VMEM

    @pl.when(layer == pl.num_programs(0) - 1)
    def _():
        out_ref[...] = x                      # single HBM writeback at the end


def run_decoder_stack(x_flat, cos, sin, mask, packed):
    wqkv, wo, lnp_w, lnp_b, wgu, wd, lnq_w, lnq_b = packed

    slab = pl.BlockSpec((ROWS, HIDDEN), lambda l: (0, 0))      # constant block -> resident
    mask_spec = pl.BlockSpec((ROWS, ROWS), lambda l: (0, 0))

    def layer_spec(arr):                                        # keyed on layer id -> prefetch
        return pl.BlockSpec((1,) + arr.shape[1:], lambda l: (l, 0, 0))

    return pl.pallas_call(
        kelso_stack_kernel,
        out_shape=jax.ShapeDtypeStruct((ROWS, HIDDEN), jnp.float32),
        grid_spec=pltpu.PrefetchScalarGridSpec(
            num_scalar_prefetch=0,
            grid=(NUM_LAYERS,),
            in_specs=[slab, slab, slab, mask_spec,
                      layer_spec(wqkv), layer_spec(wo),
                      layer_spec(lnp_w), layer_spec(lnp_b),
                      layer_spec(wgu), layer_spec(wd),
                      layer_spec(lnq_w), layer_spec(lnq_b)],
            out_specs=slab,
            scratch_shapes=[pltpu.VMEM((ROWS, HIDDEN), jnp.float32)]),
        compiler_params=pltpu.CompilerParams(
            dimension_semantics=("arbitrary",)),   # layers are sequentially dependent
    )(x_flat, cos, sin, mask, wqkv, wo, lnp_w, lnp_b, wgu, wd, lnq_w, lnq_b)


# ---------------- plain-JAX glue: embedding, masks, rotary tables ----------------

def build_mask(positions, lengths):
    # per-batch additive mask (bsz, b_n, b_n): pad keys + (optional) causal-by-position
    filt = jnp.arange(B_N)[None, :]
    pad = jnp.where(filt < lengths[:, None], 0.0, NEG)               # (bsz, b_n)
    mask = pad[:, None, :]
    if DECODER_MASK:
        dec = jnp.where(positions[:, :, None] < positions[:, None, :], NEG, 0.0)
        mask = mask + dec
    else:
        mask = jnp.broadcast_to(mask, (BSZ, B_N, B_N))
    return mask.astype(jnp.float32)


def flatten_mask(mask):
    # block-diagonal (ROWS, ROWS) mask for the flattened batch
    i = jnp.arange(ROWS)
    bi, qi = i // B_N, i % B_N
    same = bi[:, None] == bi[None, :]
    gathered = mask[bi[:, None], qi[:, None], qi[None, :]]
    return jnp.where(same, gathered, NEG).astype(jnp.float32)


def build_rope(positions):
    # positions: any int shape -> cos/sin with trailing HEAD_DIM axis
    inv_freq = 1.0 / (POS_BASE ** (jnp.arange(0, HEAD_DIM, 2, dtype=jnp.float32) / HEAD_DIM))
    freqs = positions.astype(jnp.float32)[..., None] * inv_freq
    emb = jnp.concatenate([freqs, freqs], axis=-1)
    return jnp.cos(emb), jnp.sin(emb)


def init_params(key):
    emb_key, key = jax.random.split(key)
    emb_table = jax.random.normal(emb_key, (VOCAB, HIDDEN), jnp.float32) * 0.5
    layers = []
    for l in range(NUM_LAYERS):
        ks = jax.random.split(jax.random.fold_in(key, l), 9)
        wq = jax.random.normal(ks[0], (HIDDEN, NUM_HEADS * HEAD_DIM), jnp.float32) * 0.08
        wk = jax.random.normal(ks[1], (HIDDEN, NUM_HEADS * HEAD_DIM), jnp.float32) * 0.08
        wv = jax.random.normal(ks[2], (HIDDEN, NUM_HEADS * HEAD_DIM), jnp.float32) * 0.08
        wo = jax.random.normal(ks[3], (NUM_HEADS * HEAD_DIM, HIDDEN), jnp.float32) * 0.08
        lnp_w = 1.0 + 0.05 * jax.random.normal(ks[4], (1, HIDDEN), jnp.float32)
        lnp_b = 0.05 * jax.random.normal(ks[5], (1, HIDDEN), jnp.float32)
        wg = jax.random.normal(ks[6], (HIDDEN, INTER), jnp.float32) * 0.08
        wu = jax.random.normal(ks[7], (HIDDEN, INTER), jnp.float32) * 0.08
        wd = jax.random.normal(ks[8], (INTER, HIDDEN), jnp.float32) * 0.08
        lnq_w = 1.0 + 0.05 * jax.random.normal(jax.random.fold_in(ks[4], 1), (1, HIDDEN), jnp.float32)
        lnq_b = 0.05 * jax.random.normal(jax.random.fold_in(ks[5], 1), (1, HIDDEN), jnp.float32)
        layers.append((wq, wk, wv, wo, lnp_w, lnp_b, wg, wu, wd, lnq_w, lnq_b))
    return emb_table, layers


def pack_params(layers):
    # stack per-layer weights along a leading layer axis; fuse qkv and gate/up
    wqkv = jnp.stack([jnp.concatenate([p[0], p[1], p[2]], axis=1) for p in layers])  # (L,H,3H)
    wo   = jnp.stack([p[3] for p in layers])                                         # (L,H,H)
    lnpw = jnp.stack([p[4] for p in layers])                                         # (L,1,H)
    lnpb = jnp.stack([p[5] for p in layers])
    wgu  = jnp.stack([jnp.concatenate([p[6], p[7]], axis=1) for p in layers])        # (L,H,2*INTER)
    wd   = jnp.stack([p[8] for p in layers])                                         # (L,INTER,H)
    lnqw = jnp.stack([p[9] for p in layers])
    lnqb = jnp.stack([p[10] for p in layers])
    return wqkv, wo, lnpw, lnpb, wgu, wd, lnqw, lnqb


def kelso_forward(tokens, positions, lengths, emb_table, layer_params):
    x = jnp.take(emb_table, tokens, axis=0).reshape(ROWS, HIDDEN)   # embedding (glue)
    mask = flatten_mask(build_mask(positions, lengths))             # (ROWS, ROWS)
    cos, sin = build_rope(positions.reshape(ROWS))                  # (ROWS, HEAD_DIM)
    cos = jnp.tile(cos, (1, NUM_HEADS))                             # pre-tile to HIDDEN
    sin = jnp.tile(sin, (1, NUM_HEADS))
    out = run_decoder_stack(x, cos, sin, mask, pack_params(layer_params))
    return out.reshape(BSZ, B_N, HIDDEN)


# ---------------- pure-JAX reference for the correctness check ----------------

def _ref_layer(x, mask, cos, sin, p):
    wq, wk, wv, wo, lpw, lpb, wg, wu, wd, lqw, lqb = p

    def split(t):
        return t.reshape(BSZ, B_N, NUM_HEADS, HEAD_DIM).transpose(0, 2, 1, 3)
    q, k, v = split(x @ wq), split(x @ wk), split(x @ wv)
    half = HEAD_DIM // 2

    def rope4(t):
        rot = jnp.concatenate([-t[..., half:], t[..., :half]], axis=-1)
        return t * cos[:, None] + rot * sin[:, None]
    q, k = rope4(q), rope4(k)
    s = jnp.einsum('bhqd,bhkd->bhqk', q, k) / math.sqrt(HEAD_DIM) + mask[:, None]
    w = jax.nn.softmax(s, axis=-1)
    o = jnp.einsum('bhqk,bhkd->bhqd', w, v).transpose(0, 2, 1, 3).reshape(BSZ, B_N, HIDDEN)
    x = x + o @ wo
    h1 = _layernorm(x, lpw[0], lpb[0])
    g, u = h1 @ wg, h1 @ wu
    x = x + ((g * jax.nn.sigmoid(g)) * u) @ wd
    return _layernorm(x, lqw[0], lqb[0])


def kelso_forward_ref(tokens, positions, lengths, emb_table, layer_params):
    x = jnp.take(emb_table, tokens, axis=0)
    mask = build_mask(positions, lengths)
    cos, sin = build_rope(positions)        # (BSZ, B_N, HEAD_DIM)
    for p in layer_params:
        x = _ref_layer(x, mask, cos, sin, p)
    return x


if __name__ == "__main__":
    key = jax.random.PRNGKey(0)
    tok_key, key = jax.random.split(key)
    emb_table, layer_params = init_params(key)

    tokens = jax.random.randint(tok_key, (BSZ, B_N), 0, VOCAB, dtype=jnp.int32)
    positions = jnp.array([[0, 0, 1, 1, 2, 2, 3, 3],
                           [0, 1, 1, 2, 2, 3, 3, 3]], dtype=jnp.int32)
    lengths = jnp.array([8, 6], dtype=jnp.int32)

    out = kelso_forward(tokens, positions, lengths, emb_table, layer_params)
    out = jax.block_until_ready(out)

    ref = kelso_forward_ref(tokens, positions, lengths, emb_table, layer_params)
    ref = jax.block_until_ready(ref)

    assert out.shape == (BSZ, B_N, HIDDEN)
    assert jnp.allclose(out, ref, atol=1e-4, rtol=1e-4), "mismatch vs pure-JAX reference"
    # TODO(synk): Kelso_Pooling / head are never invoked by Kelso_Model.forward, so they
    # are intentionally not implemented here.
    print("KERNEL_OK")
</pallas_src>

<mosaic_0001>
module attributes {stable_mosaic.version = 11 : i64} {
  func.func @kelso_stack_kernel(%arg0: i32, %arg1: memref<16x32xf32, #tpu.memory_space<vmem>>, %arg2: memref<16x32xf32, #tpu.memory_space<vmem>>, %arg3: memref<16x32xf32, #tpu.memory_space<vmem>>, %arg4: memref<16x16xf32, #tpu.memory_space<vmem>>, %arg5: memref<1x32x96xf32, #tpu.memory_space<vmem>>, %arg6: memref<1x32x32xf32, #tpu.memory_space<vmem>>, %arg7: memref<1x1x32xf32, #tpu.memory_space<vmem>>, %arg8: memref<1x1x32xf32, #tpu.memory_space<vmem>>, %arg9: memref<1x32x128xf32, #tpu.memory_space<vmem>>, %arg10: memref<1x64x32xf32, #tpu.memory_space<vmem>>, %arg11: memref<1x1x32xf32, #tpu.memory_space<vmem>>, %arg12: memref<1x1x32xf32, #tpu.memory_space<vmem>>, %arg13: memref<16x32xf32, #tpu.memory_space<vmem>>, %arg14: memref<16x32xf32, #tpu.memory_space<vmem>>) attributes {dimension_semantics = [#tpu.dimension_semantics<arbitrary>], iteration_bounds = array<i64: 2>, scalar_prefetch = 0 : i64, scratch_operands = 1 : i64, tpu.core_type = #tpu.core_type<tc>, window_params = [{pipeline_mode = #tpu.pipeline_mode<synchronous>, transform_indices = @transform_0, window_bounds = array<i64: 16, 32>}, {pipeline_mode = #tpu.pipeline_mode<synchronous>, transform_indices = @transform_1, window_bounds = array<i64: 16, 32>}, {pipeline_mode = #tpu.pipeline_mode<synchronous>, transform_indices = @transform_2, window_bounds = array<i64: 16, 32>}, {pipeline_mode = #tpu.pipeline_mode<synchronous>, transform_indices = @transform_3, window_bounds = array<i64: 16, 16>}, {transform_indices = @transform_4, window_bounds = array<i64: 1, 32, 96>}, {transform_indices = @transform_5, window_bounds = array<i64: 1, 32, 32>}, {transform_indices = @transform_6, window_bounds = array<i64: 1, 1, 32>}, {transform_indices = @transform_7, window_bounds = array<i64: 1, 1, 32>}, {transform_indices = @transform_8, window_bounds = array<i64: 1, 32, 128>}, {transform_indices = @transform_9, window_bounds = array<i64: 1, 64, 32>}, {transform_indices = @transform_10, window_bounds = array<i64: 1, 1, 32>}, {transform_indices = @transform_11, window_bounds = array<i64: 1, 1, 32>}, {pipeline_mode = #tpu.pipeline_mode<synchronous>, transform_indices = @transform_12, window_bounds = array<i64: 16, 32>}]} {
    %c0_i32 = arith.constant 0 : i32
    %0 = arith.cmpi eq, %arg0, %c0_i32 : i32
    %1 = arith.extui %0 : i1 to i32
    %c0_i32_0 = arith.constant 0 : i32
    %2 = arith.cmpi ne, %1, %c0_i32_0 : i32
    scf.if %2 {
      %c0_63 = arith.constant 0 : index
      %c0_64 = arith.constant 0 : index
      %152 = vector.load %arg1[%c0_63, %c0_64] : memref<16x32xf32, #tpu.memory_space<vmem>>, vector<16x32xf32>
      %c0_65 = arith.constant 0 : index
      %c0_66 = arith.constant 0 : index
      %153 = vector.load %arg14[%c0_65, %c0_66] : memref<16x32xf32, #tpu.memory_space<vmem>>, vector<16x32xf32>
      tpu.vector_store %arg14[%c0_65, %c0_66], %152 {strides = array<i32>} : memref<16x32xf32, #tpu.memory_space<vmem>>, vector<16x32xf32>,
    } else {
    }
    %c0 = arith.constant 0 : index
    %c0_1 = arith.constant 0 : index
    %3 = vector.load %arg14[%c0, %c0_1] : memref<16x32xf32, #tpu.memory_space<vmem>>, vector<16x32xf32>
    %c0_2 = arith.constant 0 : index
    %c0_3 = arith.constant 0 : index
    %4 = vector.load %arg2[%c0_2, %c0_3] : memref<16x32xf32, #tpu.memory_space<vmem>>, vector<16x32xf32>
    %c0_4 = arith.constant 0 : index
    %c0_5 = arith.constant 0 : index
    %5 = vector.load %arg3[%c0_4, %c0_5] : memref<16x32xf32, #tpu.memory_space<vmem>>, vector<16x32xf32>
    %c0_6 = arith.constant 0 : index
    %c0_7 = arith.constant 0 : index
    %6 = vector.load %arg4[%c0_6, %c0_7] : memref<16x16xf32, #tpu.memory_space<vmem>>, vector<16x16xf32>
    %c0_8 = arith.constant 0 : index
    %c0_9 = arith.constant 0 : index
    %c0_10 = arith.constant 0 : index
    %7 = vector.load %arg5[%c0_8, %c0_9, %c0_10] : memref<1x32x96xf32, #tpu.memory_space<vmem>>, vector<1x32x96xf32>
    %8 = vector.shape_cast %7 : vector<1x32x96xf32> to vector<32x96xf32>
    %cst = arith.constant dense<0.000000e+00> : vector<16x96xf32>
    %9 = tpu.matmul %3, %8, %cst {dimension_numbers = #tpu.dot_dimension_numbers<[1], [0], [0], [1], [0, 0, 1, 1], [], []>} : vector<16x32xf32>, vector<32x96xf32>, vector<16x96xf32> -> vector<16x96xf32>
    %10 = vector.extract_strided_slice %9 {offsets = [0, 0], sizes = [16, 32], strides = [1, 1]} : vector<16x96xf32> to vector<16x32xf32>
    %11 = vector.extract_strided_slice %10 {offsets = [0, 8], sizes = [16, 8], strides = [1, 1]} : vector<16x32xf32> to vector<16x8xf32>
    %cst_11 = arith.constant 0.000000e+00 : f32
    %12 = vector.broadcast %cst_11 : f32 to vector<16x8xf32>
    %13 = arith.subf %12, %11 : vector<16x8xf32>
    %14 = vector.extract_strided_slice %10 {offsets = [0, 0], sizes = [16, 8], strides = [1, 1]} : vector<16x32xf32> to vector<16x8xf32>
    %15 = vector.extract_strided_slice %10 {offsets = [0, 24], sizes = [16, 8], strides = [1, 1]} : vector<16x32xf32> to vector<16x8xf32>
    %cst_12 = arith.constant 0.000000e+00 : f32
    %16 = vector.broadcast %cst_12 : f32 to vector<16x8xf32>
    %17 = arith.subf %16, %15 : vector<16x8xf32>
    %18 = vector.extract_strided_slice %10 {offsets = [0, 16], sizes = [16, 8], strides = [1, 1]} : vector<16x32xf32> to vector<16x8xf32>
    %19 = tpu.concatenate %13, %14, %17, %18 in 1 : vector<16x8xf32>, vector<16x8xf32>, vector<16x8xf32>, vector<16x8xf32> -> vector<16x32xf32>
    %20 = arith.mulf %10, %4 : vector<16x32xf32>
    %21 = arith.mulf %19, %5 : vector<16x32xf32>
    %22 = arith.addf %20, %21 : vector<16x32xf32>
    %23 = vector.extract_strided_slice %9 {offsets = [0, 32], sizes = [16, 32], strides = [1, 1]} : vector<16x96xf32> to vector<16x32xf32>
    %24 = vector.extract_strided_slice %23 {offsets = [0, 8], sizes = [16, 8], strides = [1, 1]} : vector<16x32xf32> to vector<16x8xf32>
    %cst_13 = arith.constant 0.000000e+00 : f32
    %25 = vector.broadcast %cst_13 : f32 to vector<16x8xf32>
    %26 = arith.subf %25, %24 : vector<16x8xf32>
    %27 = vector.extract_strided_slice %23 {offsets = [0, 0], sizes = [16, 8], strides = [1, 1]} : vector<16x32xf32> to vector<16x8xf32>
    %28 = vector.extract_strided_slice %23 {offsets = [0, 24], sizes = [16, 8], strides = [1, 1]} : vector<16x32xf32> to vector<16x8xf32>
    %cst_14 = arith.constant 0.000000e+00 : f32
    %29 = vector.broadcast %cst_14 : f32 to vector<16x8xf32>
    %30 = arith.subf %29, %28 : vector<16x8xf32>
    %31 = vector.extract_strided_slice %23 {offsets = [0, 16], sizes = [16, 8], strides = [1, 1]} : vector<16x32xf32> to vector<16x8xf32>
    %32 = tpu.concatenate %26, %27, %30, %31 in 1 : vector<16x8xf32>, vector<16x8xf32>, vector<16x8xf32>, vector<16x8xf32> -> vector<16x32xf32>
    %33 = arith.mulf %23, %4 : vector<16x32xf32>
    %34 = arith.mulf %32, %5 : vector<16x32xf32>
    %35 = arith.addf %33, %34 : vector<16x32xf32>
    %36 = vector.extract_strided_slice %9 {offsets = [0, 64], sizes = [16, 32], strides = [1, 1]} : vector<16x96xf32> to vector<16x32xf32>
    %37 = vector.extract_strided_slice %22 {offsets = [0, 0], sizes = [16, 16], strides = [1, 1]} : vector<16x32xf32> to vector<16x16xf32>
    %38 = vector.extract_strided_slice %35 {offsets = [0, 0], sizes = [16, 16], strides = [1, 1]} : vector<16x32xf32> to vector<16x16xf32>
    %39 = tpu.transpose %38, [1, 0] : vector<16x16xf32> -> vector<16x16xf32>
    %cst_15 = arith.constant dense<0.000000e+00> : vector<16x16xf32>
    %40 = tpu.matmul %37, %39, %cst_15 {dimension_numbers = #tpu.dot_dimension_numbers<[1], [0], [0], [1], [0, 0, 1, 1], [], []>} : vector<16x16xf32>, vector<16x16xf32>, vector<16x16xf32> -> vector<16x16xf32>
    %cst_16 = arith.constant 2.500000e-01 : f32
    %41 = vector.broadcast %cst_16 : f32 to vector<16x16xf32>
    %42 = arith.mulf %40, %41 : vector<16x16xf32>
    %43 = arith.addf %42, %6 : vector<16x16xf32>
    %cst_17 = arith.constant dense<0xFF800000> : vector<16xf32>
    %44 = vector.multi_reduction <maximumf>, %43, %cst_17 [1] : vector<16x16xf32> to vector<16xf32>
    %45 = vector.shape_cast %44 : vector<16xf32> to vector<16x1xf32>
    %46 = vector.broadcast %45 : vector<16x1xf32> to vector<16x16xf32>
    %47 = arith.subf %43, %46 : vector<16x16xf32>
    %48 = math.exp %47 : vector<16x16xf32>
    %cst_18 = arith.constant dense<0.000000e+00> : vector<16xf32>
    %49 = vector.multi_reduction <add>, %48, %cst_18 [1] : vector<16x16xf32> to vector<16xf32>
    %50 = vector.shape_cast %49 : vector<16xf32> to vector<16x1xf32>
    %51 = tpu.reciprocal %50 : vector<16x1xf32> -> vector<16x1xf32>
    %52 = vector.broadcast %51 : vector<16x1xf32> to vector<16x16xf32>
    %53 = arith.mulf %48, %52 : vector<16x16xf32>
    %54 = vector.extract_strided_slice %36 {offsets = [0, 0], sizes = [16, 16], strides = [1, 1]} : vector<16x32xf32> to vector<16x16xf32>
    %cst_19 = arith.constant dense<0.000000e+00> : vector<16x16xf32>
    %55 = tpu.matmul %53, %54, %cst_19 {dimension_numbers = #tpu.dot_dimension_numbers<[1], [0], [0], [1], [0, 0, 1, 1], [], []>} : vector<16x16xf32>, vector<16x16xf32>, vector<16x16xf32> -> vector<16x16xf32>
    %56 = vector.extract_strided_slice %22 {offsets = [0, 16], sizes = [16, 16], strides = [1, 1]} : vector<16x32xf32> to vector<16x16xf32>
    %57 = vector.extract_strided_slice %35 {offsets = [0, 16], sizes = [16, 16], strides = [1, 1]} : vector<16x32xf32> to vector<16x16xf32>
    %58 = tpu.transpose %57, [1, 0] : vector<16x16xf32> -> vector<16x16xf32>
    %cst_20 = arith.constant dense<0.000000e+00> : vector<16x16xf32>
    %59 = tpu.matmul %56, %58, %cst_20 {dimension_numbers = #tpu.dot_dimension_numbers<[1], [0], [0], [1], [0, 0, 1, 1], [], []>} : vector<16x16xf32>, vector<16x16xf32>, vector<16x16xf32> -> vector<16x16xf32>
    %cst_21 = arith.constant 2.500000e-01 : f32
    %60 = vector.broadcast %cst_21 : f32 to vector<16x16xf32>
    %61 = arith.mulf %59, %60 : vector<16x16xf32>
    %62 = arith.addf %61, %6 : vector<16x16xf32>
    %cst_22 = arith.constant dense<0xFF800000> : vector<16xf32>
    %63 = vector.multi_reduction <maximumf>, %62, %cst_22 [1] : vector<16x16xf32> to vector<16xf32>
    %64 = vector.shape_cast %63 : vector<16xf32> to vector<16x1xf32>
    %65 = vector.broadcast %64 : vector<16x1xf32> to vector<16x16xf32>
    %66 = arith.subf %62, %65 : vector<16x16xf32>
    %67 = math.exp %66 : vector<16x16xf32>
    %cst_23 = arith.constant dense<0.000000e+00> : vector<16xf32>
    %68 = vector.multi_reduction <add>, %67, %cst_23 [1] : vector<16x16xf32> to vector<16xf32>
    %69 = vector.shape_cast %68 : vector<16xf32> to vector<16x1xf32>
    %70 = tpu.reciprocal %69 : vector<16x1xf32> -> vector<16x1xf32>
    %71 = vector.broadcast %70 : vector<16x1xf32> to vector<16x16xf32>
    %72 = arith.mulf %67, %71 : vector<16x16xf32>
    %73 = vector.extract_strided_slice %36 {offsets = [0, 16], sizes = [16, 16], strides = [1, 1]} : vector<16x32xf32> to vector<16x16xf32>
    %cst_24 = arith.constant dense<0.000000e+00> : vector<16x16xf32>
    %74 = tpu.matmul %72, %73, %cst_24 {dimension_numbers = #tpu.dot_dimension_numbers<[1], [0], [0], [1], [0, 0, 1, 1], [], []>} : vector<16x16xf32>, vector<16x16xf32>, vector<16x16xf32> -> vector<16x16xf32>
    %75 = tpu.concatenate %55, %74 in 1 : vector<16x16xf32>, vector<16x16xf32> -> vector<16x32xf32>
    %c0_25 = arith.constant 0 : index
    %c0_26 = arith.constant 0 : index
    %c0_27 = arith.constant 0 : index
    %76 = vector.load %arg6[%c0_25, %c0_26, %c0_27] : memref<1x32x32xf32, #tpu.memory_space<vmem>>, vector<1x32x32xf32>
    %77 = vector.shape_cast %76 : vector<1x32x32xf32> to vector<32x32xf32>
    %cst_28 = arith.constant dense<0.000000e+00> : vector<16x32xf32>
    %78 = tpu.matmul %75, %77, %cst_28 {dimension_numbers = #tpu.dot_dimension_numbers<[1], [0], [0], [1], [0, 0, 1, 1], [], []>} : vector<16x32xf32>, vector<32x32xf32>, vector<16x32xf32> -> vector<16x32xf32>
    %79 = arith.addf %3, %78 : vector<16x32xf32>
    %c0_29 = arith.constant 0 : index
    %c0_30 = arith.constant 0 : index
    %c0_31 = arith.constant 0 : index
    %80 = vector.load %arg7[%c0_29, %c0_30, %c0_31] : memref<1x1x32xf32, #tpu.memory_space<vmem>>, vector<1x1x32xf32>
    %81 = vector.shape_cast %80 : vector<1x1x32xf32> to vector<1x32xf32>
    %c0_32 = arith.constant 0 : index
    %c0_33 = arith.constant 0 : index
    %c0_34 = arith.constant 0 : index
    %82 = vector.load %arg8[%c0_32, %c0_33, %c0_34] : memref<1x1x32xf32, #tpu.memory_space<vmem>>, vector<1x1x32xf32>
    %83 = vector.shape_cast %82 : vector<1x1x32xf32> to vector<1x32xf32>
    %cst_35 = arith.constant dense<0.000000e+00> : vector<16xf32>
    %84 = vector.multi_reduction <add>, %79, %cst_35 [1] : vector<16x32xf32> to vector<16xf32>
    %85 = vector.shape_cast %84 : vector<16xf32> to vector<16x1xf32>
    %cst_36 = arith.constant 3.200000e+01 : f32
    %86 = vector.broadcast %cst_36 : f32 to vector<16x1xf32>
    %87 = arith.divf %85, %86 : vector<16x1xf32>
    %88 = vector.broadcast %87 : vector<16x1xf32> to vector<16x32xf32>
    %89 = arith.subf %79, %88 : vector<16x32xf32>
    %90 = arith.mulf %89, %89 : vector<16x32xf32>
    %cst_37 = arith.constant dense<0.000000e+00> : vector<16xf32>
    %91 = vector.multi_reduction <add>, %90, %cst_37 [1] : vector<16x32xf32> to vector<16xf32>
    %92 = vector.shape_cast %91 : vector<16xf32> to vector<16x1xf32>
    %cst_38 = arith.constant 3.200000e+01 : f32
    %93 = vector.broadcast %cst_38 : f32 to vector<16x1xf32>
    %94 = arith.divf %92, %93 : vector<16x1xf32>
    %95 = vector.broadcast %87 : vector<16x1xf32> to vector<16x32xf32>
    %96 = arith.subf %79, %95 : vector<16x32xf32>
    %cst_39 = arith.constant 9.99999974E-6 : f32
    %97 = vector.broadcast %cst_39 : f32 to vector<16x1xf32>
    %98 = arith.addf %94, %97 : vector<16x1xf32>
    %99 = math.rsqrt %98 : vector<16x1xf32>
    %100 = vector.broadcast %99 : vector<16x1xf32> to vector<16x32xf32>
    %101 = arith.mulf %96, %100 : vector<16x32xf32>
    %102 = vector.broadcast %81 : vector<1x32xf32> to vector<16x32xf32>
    %103 = arith.mulf %101, %102 : vector<16x32xf32>
    %104 = vector.broadcast %83 : vector<1x32xf32> to vector<16x32xf32>
    %105 = arith.addf %103, %104 : vector<16x32xf32>
    %c0_40 = arith.constant 0 : index
    %c0_41 = arith.constant 0 : index
    %c0_42 = arith.constant 0 : index
    %106 = vector.load %arg9[%c0_40, %c0_41, %c0_42] : memref<1x32x128xf32, #tpu.memory_space<vmem>>, vector<1x32x128xf32>
    %107 = vector.shape_cast %106 : vector<1x32x128xf32> to vector<32x128xf32>
    %cst_43 = arith.constant dense<0.000000e+00> : vector<16x128xf32>
    %108 = tpu.matmul %105, %107, %cst_43 {dimension_numbers = #tpu.dot_dimension_numbers<[1], [0], [0], [1], [0, 0, 1, 1], [], []>} : vector<16x32xf32>, vector<32x128xf32>, vector<16x128xf32> -> vector<16x128xf32>
    %109 = vector.extract_strided_slice %108 {offsets = [0, 0], sizes = [16, 64], strides = [1, 1]} : vector<16x128xf32> to vector<16x64xf32>
    %110 = vector.extract_strided_slice %108 {offsets = [0, 64], sizes = [16, 64], strides = [1, 1]} : vector<16x128xf32> to vector<16x64xf32>
    %111 = arith.negf %109 : vector<16x64xf32>
    %112 = math.exp %111 : vector<16x64xf32>
    %cst_44 = arith.constant 1.000000e+00 : f32
    %113 = vector.broadcast %cst_44 : f32 to vector<16x64xf32>
    %114 = arith.addf %113, %112 : vector<16x64xf32>
    %115 = arith.divf %113, %114 : vector<16x64xf32>
    %116 = arith.mulf %109, %115 : vector<16x64xf32>
    %117 = arith.mulf %116, %110 : vector<16x64xf32>
    %c0_45 = arith.constant 0 : index
    %c0_46 = arith.constant 0 : index
    %c0_47 = arith.constant 0 : index
    %118 = vector.load %arg10[%c0_45, %c0_46, %c0_47] : memref<1x64x32xf32, #tpu.memory_space<vmem>>, vector<1x64x32xf32>
    %119 = vector.shape_cast %118 : vector<1x64x32xf32> to vector<64x32xf32>
    %cst_48 = arith.constant dense<0.000000e+00> : vector<16x32xf32>
    %120 = tpu.matmul %117, %119, %cst_48 {dimension_numbers = #tpu.dot_dimension_numbers<[1], [0], [0], [1], [0, 0, 1, 1], [], []>} : vector<16x64xf32>, vector<64x32xf32>, vector<16x32xf32> -> vector<16x32xf32>
    %121 = arith.addf %79, %120 : vector<16x32xf32>
    %c0_49 = arith.constant 0 : index
    %c0_50 = arith.constant 0 : index
    %c0_51 = arith.constant 0 : index
    %122 = vector.load %arg11[%c0_49, %c0_50, %c0_51] : memref<1x1x32xf32, #tpu.memory_space<vmem>>, vector<1x1x32xf32>
    %123 = vector.shape_cast %122 : vector<1x1x32xf32> to vector<1x32xf32>
    %c0_52 = arith.constant 0 : index
    %c0_53 = arith.constant 0 : index
    %c0_54 = arith.constant 0 : index
    %124 = vector.load %arg12[%c0_52, %c0_53, %c0_54] : memref<1x1x32xf32, #tpu.memory_space<vmem>>, vector<1x1x32xf32>
    %125 = vector.shape_cast %124 : vector<1x1x32xf32> to vector<1x32xf32>
    %cst_55 = arith.constant dense<0.000000e+00> : vector<16xf32>
    %126 = vector.multi_reduction <add>, %121, %cst_55 [1] : vector<16x32xf32> to vector<16xf32>
    %127 = vector.shape_cast %126 : vector<16xf32> to vector<16x1xf32>
    %cst_56 = arith.constant 3.200000e+01 : f32
    %128 = vector.broadcast %cst_56 : f32 to vector<16x1xf32>
    %129 = arith.divf %127, %128 : vector<16x1xf32>
    %130 = vector.broadcast %129 : vector<16x1xf32> to vector<16x32xf32>
    %131 = arith.subf %121, %130 : vector<16x32xf32>
    %132 = arith.mulf %131, %131 : vector<16x32xf32>
    %cst_57 = arith.constant dense<0.000000e+00> : vector<16xf32>
    %133 = vector.multi_reduction <add>, %132, %cst_57 [1] : vector<16x32xf32> to vector<16xf32>
    %134 = vector.shape_cast %133 : vector<16xf32> to vector<16x1xf32>
    %cst_58 = arith.constant 3.200000e+01 : f32
    %135 = vector.broadcast %cst_58 : f32 to vector<16x1xf32>
    %136 = arith.divf %134, %135 : vector<16x1xf32>
    %137 = vector.broadcast %129 : vector<16x1xf32> to vector<16x32xf32>
    %138 = arith.subf %121, %137 : vector<16x32xf32>
    %cst_59 = arith.constant 9.99999974E-6 : f32
    %139 = vector.broadcast %cst_59 : f32 to vector<16x1xf32>
    %140 = arith.addf %136, %139 : vector<16x1xf32>
    %141 = math.rsqrt %140 : vector<16x1xf32>
    %142 = vector.broadcast %141 : vector<16x1xf32> to vector<16x32xf32>
    %143 = arith.mulf %138, %142 : vector<16x32xf32>
    %144 = vector.broadcast %123 : vector<1x32xf32> to vector<16x32xf32>
    %145 = arith.mulf %143, %144 : vector<16x32xf32>
    %146 = vector.broadcast %125 : vector<1x32xf32> to vector<16x32xf32>
    %147 = arith.addf %145, %146 : vector<16x32xf32>
    %c0_60 = arith.constant 0 : index
    %c0_61 = arith.constant 0 : index
    %148 = vector.load %arg14[%c0_60, %c0_61] : memref<16x32xf32, #tpu.memory_space<vmem>>, vector<16x32xf32>
    tpu.vector_store %arg14[%c0_60, %c0_61], %147 {strides = array<i32>} : memref<16x32xf32, #tpu.memory_space<vmem>>, vector<16x32xf32>,
    %c1_i32 = arith.constant 1 : i32
    %149 = arith.cmpi eq, %arg0, %c1_i32 : i32
    %150 = arith.extui %149 : i1 to i32
    %c0_i32_62 = arith.constant 0 : i32
    %151 = arith.cmpi ne, %150, %c0_i32_62 : i32
    scf.if %151 {
      %c0_63 = arith.constant 0 : index
      %c0_64 = arith.constant 0 : index
      %152 = vector.load %arg13[%c0_63, %c0_64] : memref<16x32xf32, #tpu.memory_space<vmem>>, vector<16x32xf32>
      tpu.vector_store %arg13[%c0_63, %c0_64], %147 {strides = array<i32>} : memref<16x32xf32, #tpu.memory_space<vmem>>, vector<16x32xf32>,
    } else {
    }
    return
  }
  func.func @transform_0(%arg0: i32) -> (i32, i32) {
    %c0_i32 = arith.constant 0 : i32
    %c0_i32_0 = arith.constant 0 : i32
    %c0_i32_1 = arith.constant 0 : i32
    return %c0_i32, %c0_i32_0 : i32, i32
  }
  func.func @transform_1(%arg0: i32) -> (i32, i32) {
    %c0_i32 = arith.constant 0 : i32
    %c0_i32_0 = arith.constant 0 : i32
    %c0_i32_1 = arith.constant 0 : i32
    return %c0_i32, %c0_i32_0 : i32, i32
  }
  func.func @transform_2(%arg0: i32) -> (i32, i32) {
    %c0_i32 = arith.constant 0 : i32
    %c0_i32_0 = arith.constant 0 : i32
    %c0_i32_1 = arith.constant 0 : i32
    return %c0_i32, %c0_i32_0 : i32, i32
  }
  func.func @transform_3(%arg0: i32) -> (i32, i32) {
    %c0_i32 = arith.constant 0 : i32
    %c0_i32_0 = arith.constant 0 : i32
    %c0_i32_1 = arith.constant 0 : i32
    return %c0_i32, %c0_i32_0 : i32, i32
  }
  func.func @transform_4(%arg0: i32) -> (i32, i32, i32) {
    %c0_i32 = arith.constant 0 : i32
    %c0_i32_0 = arith.constant 0 : i32
    %c0_i32_1 = arith.constant 0 : i32
    return %arg0, %c0_i32, %c0_i32_0 : i32, i32, i32
  }
  func.func @transform_5(%arg0: i32) -> (i32, i32, i32) {
    %c0_i32 = arith.constant 0 : i32
    %c0_i32_0 = arith.constant 0 : i32
    %c0_i32_1 = arith.constant 0 : i32
    return %arg0, %c0_i32, %c0_i32_0 : i32, i32, i32
  }
  func.func @transform_6(%arg0: i32) -> (i32, i32, i32) {
    %c0_i32 = arith.constant 0 : i32
    %c0_i32_0 = arith.constant 0 : i32
    %c0_i32_1 = arith.constant 0 : i32
    return %arg0, %c0_i32, %c0_i32_0 : i32, i32, i32
  }
  func.func @transform_7(%arg0: i32) -> (i32, i32, i32) {
    %c0_i32 = arith.constant 0 : i32
    %c0_i32_0 = arith.constant 0 : i32
    %c0_i32_1 = arith.constant 0 : i32
    return %arg0, %c0_i32, %c0_i32_0 : i32, i32, i32
  }
  func.func @transform_8(%arg0: i32) -> (i32, i32, i32) {
    %c0_i32 = arith.constant 0 : i32
    %c0_i32_0 = arith.constant 0 : i32
    %c0_i32_1 = arith.constant 0 : i32
    return %arg0, %c0_i32, %c0_i32_0 : i32, i32, i32
  }
  func.func @transform_9(%arg0: i32) -> (i32, i32, i32) {
    %c0_i32 = arith.constant 0 : i32
    %c0_i32_0 = arith.constant 0 : i32
    %c0_i32_1 = arith.constant 0 : i32
    return %arg0, %c0_i32, %c0_i32_0 : i32, i32, i32
  }
  func.func @transform_10(%arg0: i32) -> (i32, i32, i32) {
    %c0_i32 = arith.constant 0 : i32
    %c0_i32_0 = arith.constant 0 : i32
    %c0_i32_1 = arith.constant 0 : i32
    return %arg0, %c0_i32, %c0_i32_0 : i32, i32, i32
  }
  func.func @transform_11(%arg0: i32) -> (i32, i32, i32) {
    %c0_i32 = arith.constant 0 : i32
    %c0_i32_0 = arith.constant 0 : i32
    %c0_i32_1 = arith.constant 0 : i32
    return %arg0, %c0_i32, %c0_i32_0 : i32, i32, i32
  }
  func.func @transform_12(%arg0: i32) -> (i32, i32) {
    %c0_i32 = arith.constant 0 : i32
    %c0_i32_0 = arith.constant 0 : i32
    %c0_i32_1 = arith.constant 0 : i32
    return %c0_i32, %c0_i32_0 : i32, i32
  }
}

</mosaic_0001>

<bundles_post_ra>
// kernel: tpu_custom_call.1
= control target key start
LH: loop header
LB: loop body
LE: loop exit
PB: predicated region body
PF: predicated region fallthrough
CT: control target
= control target key end

     0   :  { %s2117_s0 = inlined_call_operand.hbm [shape: f32[16,32], index: 0, kind: input, shape index: {}]   ;;  %s2118_s1 = inlined_call_operand.hbm [shape: f32[16,32], index: 1, kind: input, shape index: {}]   ;;  %s2119_s2 = inlined_call_operand.hbm [shape: f32[16,32], index: 2, kind: input, shape index: {}]   ;;  %s2120_s3 = inlined_call_operand.hbm [shape: f32[16,16], index: 3, kind: input, shape index: {}]   ;;  %s2121_s4 = inlined_call_operand.vmem [shape: f32[2,32,96], index: 4, kind: input, shape index: {}]   ;;  %s2122_s5 = inlined_call_operand.vmem [shape: f32[2,32,32], index: 5, kind: input, shape index: {}]   ;;  %s2123_s6 = inlined_call_operand.vmem [shape: f32[2,1,32], index: 6, kind: input, shape index: {}]   ;;  %s2124_s7 = inlined_call_operand.vmem [shape: f32[2,1,32], index: 7, kind: input, shape index: {}]   ;;  %s2125_s8 = inlined_call_operand.vmem [shape: f32[2,32,128], index: 8, kind: input, shape index: {}]   ;;  %s2126_s9 = inlined_call_operand.vmem [shape: f32[2,64,32], index: 9, kind: input, shape index: {}]   ;;  %s2127_s10 = inlined_call_operand.vmem [shape: f32[2,1,32], index: 10, kind: input, shape index: {}]   ;;  %s2128_s11 = inlined_call_operand.vmem [shape: f32[2,1,32], index: 11, kind: input, shape index: {}]   ;;  %s2129_s12 = inlined_call_operand.hbm [shape: f32[16,32], index: 12, kind: output, shape index: {}]  }
   0x1   :  { %2130 = sst [smem:[#allocation16_spill]] %s2117_s0 }
   0x2   :  { %2131 = sst [smem:[#allocation17_spill]] %s2118_s1 }
   0x3   :  { %2132 = sst [smem:[#allocation18_spill]] %s2119_s2 }
   0x4   :  { %17 = vsyncpa [#allocation4], 0 }
   0x5   :  { %18 = vsyncpa [#allocation7], 0 }
   0x6   :  { %19 = vsyncpa [#allocation10], 0 }
   0x7   :  { %20 = vsyncpa [#allocation5], 0  ;;  %s1845_s21 = smov 0  }
   0x8 LB: > { %s1851_s22 = sadd.s32 4294967295, %s1758_s21   ;;  %p1418_p0 = scmp.ge.s32.totalorder %s1758_s21, 1  ;;  %s1758_s21 = sphi %s1845_s21, %s26_s21  }
   0x9   : > { %p344_p1 = scmp.lt.s32.totalorder %s1758_s21, 3  ;;  %p1419_p2 = scmp.ne.s32.totalorder %s1851_s22, 0 }
   0xa   : > { %p1502_p3 = scmp.eq.s32.totalorder %s1851_s22, 0  ;;  %s2133_s1 = sld [smem:[#allocation17_spill]] }
   0xb   : > { %p1860_p4 = pnand %p1418_p0, %p344_p1  ;;  %s2135_s0 = sld [smem:[#allocation16_spill]] }
   0xc   : > { %s1760_s30 = smov [#allocation6]   ;;  %s1761_s15 = smov [#allocation3]  }
   0xd   : > { %p1489_p5 = pneg %p1860_p4  ;;  %s371_s13 = sshll.u32 %s1760_s30, 4  ;;  %s372_s13 = int_to_ptr.vmem [resolvable:$true] %s371_s13 }
   0xe   : > { %s357_s16 = sshll.u32 %s1761_s15, 4  ;;  %s2137_s2 = sld [smem:[#allocation18_spill]]  ;;  %s358_s16 = int_to_ptr.vmem [resolvable:$true] %s357_s16 }
   0xf   : > { %p1871_p6 = pnand %p1502_p3, %p1489_p5  ;;  %s1762_s20 = smov 128  }
  0x10   : > { %s369_s25 = sshll.u32 %s2133_s1, 4  ;;  %s1763_s23 = smov 8   ;;  %s370_s25 = int_to_ptr.hbm [resolvable:$true] %s369_s25 }
  0x11   : > { %s355_s29 = sshll.u32 %s2135_s0, 4  ;;  %s1764_s24 = smov [#allocation8]   ;;  %s356_s29 = int_to_ptr.hbm [resolvable:$true] %s355_s29 }
  0x12   : > { %1495 = dma.hbm_to_vmem [thread:$0]  (!%p1871_p6), %s370_s25, 256, %s372_s13, [#allocation7], %s1762_s20, %s1762_s20, %s1763_s23  }
  0x13   : > { %1492 = dma.hbm_to_vmem [thread:$0]  (!%p1871_p6), %s356_s29, 256, %s358_s16, [#allocation4], %s1762_s20, %s1762_s20, %s1763_s23  }
  0x14   : > { %s383_s19 = sshll.u32 %s2137_s2, 4  ;;  %s385_s27 = sshll.u32 %s1764_s24, 4  ;;  %s384_s19 = int_to_ptr.hbm [resolvable:$true] %s383_s19  ;;  %s386_s27 = int_to_ptr.vmem [resolvable:$true] %s385_s27 }
  0x15   : > { %s397_s0 = sshll.u32 %s2120_s3, 4  ;;  %s1765_s15 = smov [#allocation9]   ;;  %s398_s0 = int_to_ptr.hbm [resolvable:$true] %s397_s0 }
  0x16   : > { %1498 = dma.hbm_to_vmem [thread:$0]  (!%p1871_p6), %s384_s19, 256, %s386_s27, [#allocation7], %s1762_s20, %s1762_s20, %s1763_s23  }
  0x17   : > { %s399_s17 = sshll.u32 %s1765_s15, 4  ;;  %471 = sbr.rel (%p1860_p4) target bundleno = 2269 (0x8dd), region = 68  ;;  %s400_s17 = int_to_ptr.vmem [resolvable:$true] %s399_s17 }
  0x18   : > { %1501 = dma.hbm_to_vmem [thread:$0]  (!%p1871_p6), %s398_s0, 256, %s400_s17, [#allocation10], %s1762_s20, %s1762_s20, %s1763_s23  }
  0x1c   : > { %1741 = dma.done.wait (%p1502_p3), [#allocation4], 256  }
  0x1d   : > { %1743 = vsyncadd (%p1502_p3), [#allocation4], 4294967040 }
  0x1e   : > { %1745 = dma.done.wait (%p1502_p3), [#allocation7], 512  }
  0x1f   : > { %1747 = vsyncadd (%p1502_p3), [#allocation7], 4294966784 }
  0x20   : > { %1749 = dma.done.wait (%p1502_p3), [#allocation10], 256  }
  0x21   : > { %1751 = vsyncadd (%p1502_p3), [#allocation10], 4294967040  ;;  %p551_p7 = scmp.lt.s32.totalorder %s1851_s22, 1 }
  0x23   : > { %s1905_s0 = scalar_select %p551_p7, %s1851_s22, 1 }
  0x25   : > { %s1465_s25 = sshll.u32 %s1905_s0, 5  ;;  %s566_s28 = scalar_lea.vmem %s2124_s7, %s1905_s0 }
  0x26   : > { %s555_s18 = scalar_lea.vmem %s2121_s4, %s1465_s25  ;;  %s1918_s23 = scalar_lea.vmem %s2122_s5, %s1465_s25 }
  0x27   : > { %s1927_s17 = scalar_lea.vmem %s2125_s8, %s1465_s25  ;;  %s1468_s26 = sshll.u32 %s1905_s0, 6 }
  0x28   : > { %s579_s14 = scalar_lea.vmem %s2127_s10, %s1905_s0  ;;  %s1937_s19 = scalar_lea.vmem %s2126_s9, %s1468_s26 }
  0x29   : > { %s582_s24 = scalar_lea.vmem %s2128_s11, %s1905_s0  ;;  %586 = sbr.rel (%p1419_p2) target bundleno = 49 (0x31), region = 88 }
  0x2e   : > { %v587_v0 = vld [vmem:[#allocation3] sm:$0xff]  ;;  %vm589_vm0 = vcmask 261120   ;;  %v588_v1 = vld [vmem:[#allocation3 + $0x8] sm:$0xff] }
  0x2f   : > { %590 = vst.msk [vmem:[#allocation2] sm:$0xff] %vm589_vm0, %v587_v0 }
  0x30   : > { %591 = vst.msk [vmem:[#allocation2 + $0x8] sm:$0xff] %vm589_vm0, %v588_v1 }
  0x31 PF: > { %v603_v2 = vld [vmem:[%s555_s18 + $0x18] sm:$0xff]  ;;  %v602_v3 = vld [vmem:[%s555_s18 + $0x10] sm:$0xff]  ;;  %v601_v4 = vld [vmem:[%s555_s18 + $0x8] sm:$0xff]  ;;  %s1766_s1 = smov 32   ;;  %vm604_vm1 = vcmask 261120   ;;  %s1767_s2 = smov 88  }
  0x32   : > { %623 = vmatpush.msra.mxu0 %v603_v2  ;;  %v1945_v5 = vld [vmem:[#allocation6 + $0x8] sm:$0xff]  ;;  %v600_v6 = vld [vmem:[%s555_s18] sm:$0xff]  ;;  %s1768_s25 = smov 104   ;;  %s1769_s13 = smov 8   ;;  %vm652_vm2 = vcmask 64512   ;;  %vm655_vm3 = vcmask 130048  }
  0x33   : > { %689 = vrot.lane.b32.xlu2 %v1945_v5, %s1766_s1  ;;  %v594_v13 = vld [vmem:[#allocation6] sm:$0xff]  ;;  %vm658_vm4 = vcmask 195584   ;;  %v596_v17 = vld [vmem:[#allocation8] sm:$0xff]  ;;  %v597_v23 = vld [vmem:[#allocation8 + $0x8] sm:$0xff]  ;;  %s1770_s18 = smov 120   ;;  %s1771_s27 = smov 80  }
  0x34   : > { %624 = vmatpush.msra.mxu0 %v602_v3  ;;  %s1772_s30 = smov 96   ;;  %s1773_s15 = smov 112   ;;  %v598_v59 = vld [vmem:[#allocation9] sm:$0xff]  ;;  %v599_v0 = vld [vmem:[#allocation9 + $0x8] sm:$0xff] }
  0x35   : > { %s1774_s26 = smov 64   ;;  %s1775_s29 = smov 48  }
  0x36   : > { %625 = vmatpush.msra.mxu0 %v601_v4  ;;  %v1949_v7 = vld [vmem:[#allocation2] sm:$0xff]  ;;  %s1776_s16 = smov 16   ;;  %s2138_s20 = scalar_lea.vmem %s2123_s6, %s1905_s0 }
  0x37   : > { %v1953_v8 = vld [vmem:[#allocation2 + $0x8] sm:$0xff]  ;;  %p1460_p8 = scmp.ne.s32.totalorder %s1851_s22, 1 }
  0x38   : > { %626 = vmatpush.msra.mxu0 %v600_v6 }
  0x39   : > { %1438 = vmatmul.msk.f32.vlgmr.msra.gmra.mxu0 %vm604_vm1, %v1949_v7 }
  0x41   : > { %1439 = vmatmul.msk.f32.gmra.mxu0 %vm604_vm1, %v1953_v8 }
  0x8d   : > { %v690_v28 = vpop.permute.xlu2 %689 }
  0xb6   : > { %v1957_v9 = vpop.f32.mrf.mxu0 }
  0xb7   : > { %v634_v10 = vsub.f32 0.0, %v1957_v9  ;;  %v661_v42 = vmul.f32 %v1957_v9, %v594_v13 }
  0xb9   : > { %667 = vrot.lane.b32.xlu1 %v634_v10, %s1767_s2 }
  0xbe   : > { %v1960_v11 = vpop.f32.mrf.mxu0 }
  0xbf   : > { %v635_v12 = vsub.f32 0.0, %v1960_v11  ;;  %v694_v29 = vmul.f32 %v690_v28, %v1960_v11  ;;  %v662_v50 = vmul.f32 %v1960_v11, %v1945_v5 }
  0xc1   : > { %673 = vrot.lane.b32.xlu1 %v1957_v9, %s1768_s25  ;;  %669 = vrot.lane.b32.xlu0 %v635_v12, %s1767_s2 }
  0xc9   : > { %675 = vrot.lane.b32.xlu0 %v1960_v11, %s1768_s25 }
  0xd1   : > { %687 = vrot.lane.b32.xlu0 %v594_v13, %s1766_s1 }
  0xd9   : > { %646 = vrot.lane.b32.xlu0 %v1957_v9, %s1769_s13 }
 0x12b   : > { %v668_v14 = vpop.permute.xlu1 %667 }
 0x133   : > { %v674_v15 = vpop.permute.xlu1 %673  ;;  %v670_v16 = vpop.permute.xlu0 %669 }
 0x134   : > { %v679_v18 = vsel %vm652_vm2, %v668_v14, %v674_v15 }
 0x135   : > { %v681_v19 = vsel %vm655_vm3, %v679_v18, %v668_v14 }
 0x136   : > { %v683_v20 = vsel %vm658_vm4, %v681_v19, %v674_v15 }
 0x137   : > { %v695_v21 = vmul.f32 %v683_v20, %v596_v17 }
 0x139   : > { %699 = vrot.lane.b32.xlu1 %v695_v21, %s1766_s1 }
 0x13b   : > { %v676_v22 = vpop.permute.xlu0 %675 }
 0x13c   : > { %v680_v24 = vsel %vm652_vm2, %v670_v16, %v676_v22 }
 0x13d   : > { %v682_v25 = vsel %vm655_vm3, %v680_v24, %v670_v16 }
 0x13e   : > { %v684_v26 = vsel %vm658_vm4, %v682_v25, %v676_v22 }
 0x13f   : > { %v696_v27 = vmul.f32 %v684_v26, %v597_v23 }
 0x141   : > { %640 = vrot.lane.b32.xlu1 %v635_v12, %s1770_s18  ;;  %701 = vrot.lane.b32.xlu2 %v696_v27, %s1766_s1 }
 0x143   : > { %v688_v31 = vpop.permute.xlu0 %687 }
 0x144   : > { %v693_v36 = vmul.f32 %v688_v31, %v1957_v9 }
 0x149   : > { %638 = vrot.lane.b32.xlu2 %v634_v10, %s1770_s18 }
 0x14b   : > { %v647_v34 = vpop.permute.xlu0 %646 }
 0x151   : > { %648 = vrot.lane.b32.xlu2 %v1960_v11, %s1769_s13 }
 0x19b   : > { %v702_v30 = vpop.permute.xlu2 %701 }
 0x19c   : > { %v706_v32 = vadd.f32 %v702_v30, %v694_v29 }
 0x19e   : > { %839 = vrot.lane.b32.xlu2 %v706_v32, %s1771_s27  ;;  %711 = vrot.lane.b32.xlu0 %v706_v32, %s1772_s30 }
 0x1a3   : > { %v639_v33 = vpop.permute.xlu2 %638 }
 0x1a4   : > { %v653_v35 = vsel %vm652_vm2, %v639_v33, %v647_v34 }
 0x1a5   : > { %v656_v37 = vsel %vm655_vm3, %v653_v35, %v639_v33 }
 0x1a6   : > { %v659_v40 = vsel %vm658_vm4, %v656_v37, %v647_v34 }
 0x1a7   : > { %v663_v41 = vmul.f32 %v659_v40, %v596_v17 }
 0x1a9   : > { %v665_v46 = vadd.f32 %v663_v41, %v661_v42 }
 0x1ab   : > { %v700_v38 = vpop.permute.xlu1 %699  ;;  %v649_v43 = vpop.permute.xlu2 %648 }
 0x1ac   : > { %v705_v39 = vadd.f32 %v700_v38, %v693_v36  ;;  %v1540_v36 = vpack.i.bf16 %v1957_v9, %v1960_v11 }
 0x1ae   : > { %837 = vrot.lane.b32.xlu0 %v705_v39, %s1771_s27  ;;  %709 = vrot.lane.b32.xlu1 %v705_v39, %s1772_s30 }
 0x1b3   : > { %v641_v44 = vpop.permute.xlu1 %640 }
 0x1b4   : > { %v654_v45 = vsel %vm652_vm2, %v641_v44, %v649_v43 }
 0x1b5   : > { %v657_v47 = vsel %vm655_vm3, %v654_v45, %v641_v44 }
 0x1b6   : > { %v660_v48 = vsel %vm658_vm4, %v657_v47, %v649_v43  ;;  %833 = vrot.lane.b32.xlu1 %v665_v46, %s1773_s15 }
 0x1b7   : > { %v664_v49 = vmul.f32 %v660_v48, %v597_v23 }
 0x1b9   : > { %v666_v51 = vadd.f32 %v664_v49, %v662_v50 }
 0x1bb   : > { %835 = vrot.lane.b32.xlu2 %v666_v51, %s1773_s15 }
 0x1f8   : > { %v840_v52 = vpop.permute.xlu2 %839 }
 0x1f9   : > { %1446 = vmatpush.xpose.msk.msra.mxu3 %vm655_vm3, %v840_v52 }
 0x210   : > { %v712_v53 = vpop.permute.xlu0 %711 }
 0x211   : > { %1440 = vmatpush.xpose.msk.msra.mxu1 %vm655_vm3, %v712_v53 }
 0x215   : > { %v836_v57 = vpop.permute.xlu2 %835 }
 0x220   : > { %v710_v54 = vpop.permute.xlu1 %709  ;;  %v838_v55 = vpop.permute.xlu0 %837 }
 0x221   : > { %1441 = vmatpush.xpose.msk.msra.mxu1 %vm655_vm3, %v710_v54  ;;  %1447 = vmatpush.xpose.msk.msra.mxu3 %vm655_vm3, %v838_v55 }
 0x224   : > { %1442 = vmatmul.msk.f32.vlgmr.msra.gmra.mxu1 %vm655_vm3, %v665_v46 }
 0x228   : > { %v834_v56 = vpop.permute.xlu1 %833 }
 0x229   : > { %1448 = vmatmul.msk.f32.vlgmr.msra.gmra.mxu3 %vm655_vm3, %v834_v56 }
 0x22c   : > { %1443 = vmatmul.msk.f32.gmra.mxu1 %vm655_vm3, %v666_v51 }
 0x231   : > { %1449 = vmatmul.msk.f32.gmra.mxu3 %vm655_vm3, %v836_v57 }
 0x2a1   : > { %v740_v58 = vpop.f32.mrf.mxu1 }
 0x2a2   : > { %v746_v60 = vmul.f32 0.25, %v740_v58 }
 0x2a4   : > { %v748_v61 = vadd.f32 %v746_v60, %v598_v59 }
 0x2a6   : > { %v750_v62 = vsel %vm655_vm3, %v748_v61, -inf }
 0x2a7   : > { %751 = vmax.xlane.f32.xlu0 %v750_v62 }
 0x2a9   : > { %v743_v63 = vpop.f32.mrf.mxu1 }
 0x2aa   : > { %v747_v1 = vmul.f32 0.25, %v743_v63 }
 0x2ac   : > { %v866_v2 = vpop.f32.mrf.mxu3  ;;  %v749_v3 = vadd.f32 %v747_v1, %v599_v0 }
 0x2ad   : > { %v872_v4 = vmul.f32 0.25, %v866_v2 }
 0x2ae   : > { %v753_v5 = vsel %vm655_vm3, %v749_v3, -inf }
 0x2af   : > { %754 = vmax.xlane.f32.xlu1 %v753_v5  ;;  %v874_v6 = vadd.f32 %v872_v4, %v598_v59 }
 0x2b1   : > { %v876_v10 = vsel %vm655_vm3, %v874_v6, -inf }
 0x2b2   : > { %877 = vmax.xlane.f32.xlu2 %v876_v10 }
 0x2b4   : > { %v869_v12 = vpop.f32.mrf.mxu3 }
 0x2b5   : > { %v873_v13 = vmul.f32 0.25, %v869_v12 }
 0x2b7   : > { %v875_v14 = vadd.f32 %v873_v13, %v599_v0 }
 0x2b9   : > { %v879_v15 = vsel %vm655_vm3, %v875_v14, -inf }
 0x2ba   : > { %880 = vmax.xlane.f32.xlu2 %v879_v15 }
 0x31a   : > { %v752_v16 = vpop.xlane.xlu0 %751 }
 0x31b   : > { %v756_v17 = vsub.f32 %v748_v61, %v752_v16 }
 0x31d   : > { %v758_v18 = vmul.f32 1.442695, %v756_v17 }
 0x31f   : > { %1554 = vpow2.f32 %v758_v18 }
 0x322   : > { %v755_v19 = vpop.xlane.xlu1 %754 }
 0x323   : > { %v757_v20 = vsub.f32 %v749_v3, %v755_v19 }
 0x325   : > { %v2001_v21 = vpop.eup %1554  ;;  %v760_v22 = vmul.f32 1.442695, %v757_v20  ;;  %v878_v23 = vpop.xlane.xlu2 %877 }
 0x326   : > { %v882_v24 = vsub.f32 %v874_v6, %v878_v23  ;;  %v762_v25 = vsel %vm655_vm3, %v2001_v21, 0.0 }
 0x327   : > { %1556 = vpow2.f32 %v760_v22  ;;  %763 = vadd.xlane.f32.xlu0 %v762_v25 }
 0x328   : > { %v884_v26 = vmul.f32 1.442695, %v882_v24 }
 0x32a   : > { %1558 = vpow2.f32 %v884_v26 }
 0x32d   : > { %v2005_v27 = vpop.eup %1556  ;;  %v881_v28 = vpop.xlane.xlu2 %880 }
 0x32e   : > { %v883_v29 = vsub.f32 %v875_v14, %v881_v28  ;;  %v765_v30 = vsel %vm655_vm3, %v2005_v27, 0.0 }
 0x32f   : > { %766 = vadd.xlane.f32.xlu1 %v765_v30  ;;  %v971_v30 = vld [vmem:[%s1918_s23 + $0x10] sm:$0xff] }
 0x330   : > { %v2009_v31 = vpop.eup %1558  ;;  %v886_v32 = vmul.f32 1.442695, %v883_v29  ;;  %v972_v29 = vld [vmem:[%s1918_s23 + $0x18] sm:$0xff] }
 0x331   : > { %v888_v33 = vsel %vm655_vm3, %v2009_v31, 0.0  ;;  %991 = vmatpush.msrb.mxu0 %v972_v29 }
 0x332   : > { %1560 = vpow2.f32 %v886_v32  ;;  %889 = vadd.xlane.f32.xlu2 %v888_v33  ;;  %v970_v32 = vld [vmem:[%s1918_s23 + $0x8] sm:$0xff]  ;;  %v969_v33 = vld [vmem:[%s1918_s23] sm:$0xff] }
 0x333   : > { %992 = vmatpush.msrb.mxu0 %v971_v30 }
 0x335   : > { %993 = vmatpush.msrb.mxu0 %v970_v32 }
 0x337   : > { %994 = vmatpush.msrb.mxu0 %v969_v33 }
 0x338   : > { %v2013_v34 = vpop.eup %1560 }
 0x339   : > { %v891_v35 = vsel %vm655_vm3, %v2013_v34, 0.0 }
 0x33a   : > { %892 = vadd.xlane.f32.xlu1 %v891_v35 }
 0x33b   : > { %1541 = vrot.lane.b32.xlu0 %v1540_v36, %s1774_s26 }
 0x34a   : > { %1546 = vrot.lane.b32.xlu2 %v1540_v36, %s1775_s29 }
 0x39a   : > { %v764_v37 = vpop.xlane.xlu0 %763 }
 0x39b   : > { %1562 = vrcp.f32 %v764_v37  ;;  %v779_v9 = vand.u32 2147483648, %v764_v37  ;;  %vm773_vm6 = vweird.f32 %v764_v37  ;;  %v777_v46 = vand.u32 2147483647, %v764_v37 }
 0x39d   : > { %v780_v50 = vor.u32 1.1754944e-38, %v779_v9  ;;  %vm778_vm8 = vcmp.eq.f32.partialorder %v777_v46, 8.507059e+37 }
 0x3a1   : > { %v1563_v38 = vpop.eup %1562 }
 0x3a2   : > { %v769_v39 = vmul.f32 %v1563_v38, %v764_v37  ;;  %v767_v40 = vpop.xlane.xlu1 %766  ;;  %vm774_vm5 = vweird.f32 %v1563_v38 }
 0x3a3   : > { %1564 = vrcp.f32 %v767_v40  ;;  %vm775_vm7 = vmor %vm773_vm6, %vm774_vm5  ;;  %v793_v60 = vand.u32 2147483648, %v767_v40  ;;  %vm787_vm10 = vweird.f32 %v767_v40  ;;  %v791_v63 = vand.u32 2147483647, %v767_v40 }
 0x3a4   : > { %v770_v41 = vsub.f32 1.0, %v769_v39 }
 0x3a5   : > { %v890_v42 = vpop.xlane.xlu2 %889  ;;  %v794_v4 = vor.u32 1.1754944e-38, %v793_v60  ;;  %vm792_vm12 = vcmp.eq.f32.partialorder %v791_v63, 8.507059e+37  ;;  %v1070_v60 = vld [vmem:[%s1927_s17 + $0x18] sm:$0xff]  ;;  %v1067_v63 = vld [vmem:[%s1927_s17] sm:$0xff] }
 0x3a6   : > { %v771_v43 = vmul.f32 %v1563_v38, %v770_v41  ;;  %1566 = vrcp.f32 %v890_v42  ;;  %v905_v14 = vand.u32 2147483648, %v890_v42  ;;  %vm899_vm14 = vweird.f32 %v890_v42  ;;  %1089 = vmatpush.msrb.mxu1 %v1070_v60 }
 0x3a7   : > { %v903_v15 = vand.u32 2147483647, %v890_v42 }
 0x3a8   : > { %v772_v44 = vadd.f32 %v1563_v38, %v771_v43  ;;  %v906_v19 = vor.u32 1.1754944e-38, %v905_v14 }
 0x3a9   : > { %v1565_v45 = vpop.eup %1564  ;;  %vm904_vm0 = vcmp.eq.f32.partialorder %v903_v15, 8.507059e+37 }
 0x3aa   : > { %v783_v11 = vmul.f32 %v1565_v45, %v767_v40  ;;  %v776_v49 = vsel %vm775_vm7, %v1563_v38, %v772_v44  ;;  %vm788_vm9 = vweird.f32 %v1565_v45 }
 0x3ab   : > { %v781_v56 = vsel %vm778_vm8, %v780_v50, %v776_v49  ;;  %vm789_vm11 = vmor %vm787_vm10, %vm788_vm9 }
 0x3ac   : > { %v1567_v47 = vpop.eup %1566  ;;  %v784_v48 = vsub.f32 1.0, %v783_v11  ;;  %v796_v62 = vmul.f32 %v2001_v21, %v781_v56  ;;  %v1777_v11 = vmov 32.0  }
 0x3ad   : > { %v895_v51 = vmul.f32 %v1567_v47, %v890_v42  ;;  %v893_v52 = vpop.xlane.xlu1 %892  ;;  %v1542_v54 = vpop.permute.xlu0 %1541  ;;  %vm900_vm13 = vweird.f32 %v1567_v47 }
 0x3ae   : > { %v785_v53 = vmul.f32 %v1565_v45, %v784_v48  ;;  %1568 = vrcp.f32 %v893_v52  ;;  %v1543_v55 = vunpack.i.l.bf16 %v1542_v54  ;;  %v1547_v58 = vpop.permute.xlu2 %1546  ;;  %v1544_v61 = vunpack.i.h.bf16 %v1542_v54  ;;  %vm901_vm15 = vmor %vm899_vm14, %vm900_vm13 }
 0x3af   : > { %v896_v57 = vsub.f32 1.0, %v895_v51  ;;  %v1548_v0 = vunpack.i.l.bf16 %v1547_v58  ;;  %v1549_v6 = vunpack.i.h.bf16 %v1547_v58  ;;  %v919_v22 = vand.u32 2147483648, %v893_v52 }
 0x3b0   : > { %v786_v59 = vadd.f32 %v1565_v45, %v785_v53  ;;  %824 = vmatpush.msra.mxu2 %v1543_v55  ;;  %vm913_vm4 = vweird.f32 %v893_v52  ;;  %v917_v24 = vand.u32 2147483647, %v893_v52  ;;  %1570 = vrcp.f32 %v1777_v11 }
 0x3b1   : > { %v897_v2 = vmul.f32 %v1567_v47, %v896_v57  ;;  %v920_v26 = vor.u32 1.1754944e-38, %v919_v22  ;;  %v1551_v22 = vld [vmem:[%s566_s28] ss:$0 sm:$0xff] }
 0x3b2   : > { %825 = vmatpush.msra.mxu2 %v1544_v61  ;;  %v790_v3 = vsel %vm789_vm11, %v1565_v45, %v786_v59  ;;  %vm918_vm6 = vcmp.eq.f32.partialorder %v917_v24, 8.507059e+37  ;;  %v1069_v61 = vld [vmem:[%s1927_s17 + $0x10] sm:$0xff] }
 0x3b3   : > { %1444 = vmatmul.msk.f32.vlgmr.msra.gmra.mxu2 %vm655_vm3, %v796_v62  ;;  %v795_v10 = vsel %vm792_vm12, %v794_v4, %v790_v3  ;;  %v898_v12 = vadd.f32 %v1567_v47, %v897_v2  ;;  %1090 = vmatpush.msrb.mxu1 %v1069_v61  ;;  %v1068_v62 = vld [vmem:[%s1927_s17 + $0x8] sm:$0xff] }
 0x3b4   : > { %v1569_v1 = vpop.eup %1568  ;;  %950 = vmatpush.msrb.mxu2 %v1548_v0  ;;  %v797_v16 = vmul.f32 %v2005_v27, %v795_v10 }
 0x3b5   : > { %v909_v5 = vmul.f32 %v1569_v1, %v893_v52  ;;  %v902_v18 = vsel %vm901_vm15, %v1567_v47, %v898_v12  ;;  %vm914_vm2 = vweird.f32 %v1569_v1  ;;  %1091 = vmatpush.msrb.mxu1 %v1068_v62 }
 0x3b6   : > { %951 = vmatpush.msrb.mxu2 %v1549_v6  ;;  %v907_v20 = vsel %vm904_vm0, %v906_v19, %v902_v18  ;;  %vm915_vm5 = vmor %vm913_vm4, %vm914_vm2  ;;  %v1571_v46 = vpop.eup %1570  ;;  %v1550_v18 = vld [vmem:[%s2138_s20] ss:$0 sm:$0xff]  ;;  %vm1158_vm2 = vcmask 523264  }
 0x3b7   : > { %v910_v13 = vsub.f32 1.0, %v909_v5  ;;  %v922_v23 = vmul.f32 %v2009_v31, %v907_v20  ;;  %v1013_v47 = vmul.f32 32.0, %v1571_v46  ;;  %1092 = vmatpush.msrb.mxu1 %v1067_v63 }
 0x3b9   : > { %v911_v17 = vmul.f32 %v1569_v1, %v910_v13  ;;  %v1014_v48 = vsub.f32 1.0, %v1013_v47 }
 0x3bb   : > { %1445 = vmatmul.msk.f32.gmra.mxu2 %vm655_vm3, %v797_v16  ;;  %v912_v21 = vadd.f32 %v1569_v1, %v911_v17  ;;  %v1015_v49 = vmul.f32 %v1571_v46, %v1014_v48 }
 0x3bd   : > { %v916_v25 = vsel %vm915_vm5, %v1569_v1, %v912_v21 }
 0x3be   : > { %v921_v27 = vsel %vm918_vm6, %v920_v26, %v916_v25 }
 0x3bf   : > { %v923_v28 = vmul.f32 %v2013_v34, %v921_v27 }
 0x3c3   : > { %1450 = vmatmul.msk.f32.vlgmr.msrb.gmra.mxu2 %vm655_vm3, %v922_v23 }
 0x3cb   : > { %1451 = vmatmul.msk.f32.gmra.mxu2 %vm655_vm3, %v923_v28 }
 0x436   : > { %v827_v31 = vpop.f32.mrf.mxu2 }
 0x43e   : > { %v830_v35 = vpop.f32.mrf.mxu2 }
 0x446   : > { %v953_v36 = vpop.f32.mrf.mxu2 }
 0x447   : > { %961 = vrot.lane.b32.xlu1 %v953_v36, %s1776_s16  ;;  %v1155_v36 = vld [vmem:[%s1937_s19 + $0x28] sm:$0xff] }
 0x44e   : > { %v956_v37 = vpop.f32.mrf.mxu2 }
 0x44f   : > { %963 = vrot.lane.b32.xlu0 %v956_v37, %s1776_s16 }
 0x4b9   : > { %v962_v38 = vpop.permute.xlu1 %961 }
 0x4ba   : > { %v967_v34 = vsel %vm655_vm3, %v827_v31, %v962_v38  ;;  %v1157_v31 = vld [vmem:[%s1937_s19 + $0x38] sm:$0xff]  ;;  %v1154_v38 = vld [vmem:[%s1937_s19 + $0x20] sm:$0xff] }
 0x4bb   : > { %1452 = vmatmul.msk.f32.vlgmr.msrb.gmra.mxu0 %vm604_vm1, %v967_v34  ;;  %1173 = vmatpush.msrb.mxu3 %v1157_v31  ;;  %v1153_v34 = vld [vmem:[%s1937_s19 + $0x18] sm:$0xff] }
 0x4c1   : > { %v964_v39 = vpop.permute.xlu0 %963 }
 0x4c2   : > { %v968_v40 = vsel %vm655_vm3, %v830_v35, %v964_v39  ;;  %vm1017_vm3 = vweird.f32 %v1571_v46  ;;  %v1156_v35 = vld [vmem:[%s1937_s19 + $0x30] sm:$0xff] }
 0x4c3   : > { %1453 = vmatmul.msk.f32.gmra.mxu0 %vm604_vm1, %v968_v40  ;;  %1174 = vmatpush.msrb.mxu3 %v1156_v35  ;;  %v1152_v39 = vld [vmem:[%s1937_s19 + $0x10] sm:$0xff]  ;;  %v1151_v40 = vld [vmem:[%s1937_s19 + $0x8] sm:$0xff] }
 0x4c5   : > { %1175 = vmatpush.msrb.mxu3 %v1155_v36 }
 0x4c7   : > { %1176 = vmatpush.msrb.mxu3 %v1154_v38 }
 0x4c9   : > { %1177 = vmatpush.msrb.mxu3 %v1153_v34  ;;  %v1553_v34 = vld [vmem:[%s582_s24] ss:$0 sm:$0xff] }
 0x4cb   : > { %1178 = vmatpush.msrb.mxu3 %v1152_v39 }
 0x4cd   : > { %1179 = vmatpush.msrb.mxu3 %v1151_v40 }
 0x538   : > { %v996_v41 = vpop.f32.mrf.mxu0 }
 0x539   : > { %v2037_v42 = vadd.f32 %v996_v41, %v1949_v7  ;;  %v1016_v7 = vadd.f32 %v1571_v46, %v1015_v49 }
 0x53b   : > { %v1006_v43 = vsel %vm604_vm1, %v2037_v42, 0.0  ;;  %v2046_v50 = vsel %vm1017_vm3, %v1571_v46, %v1016_v7 }
 0x53c   : > { %1007 = vadd.xlane.f32.xlu0 %v1006_v43 }
 0x540   : > { %v999_v44 = vpop.f32.mrf.mxu0 }
 0x541   : > { %v2042_v45 = vadd.f32 %v999_v44, %v1953_v8 }
 0x543   : > { %v1009_v9 = vsel %vm604_vm1, %v2042_v45, 0.0 }
 0x544   : > { %1010 = vadd.xlane.f32.xlu2 %v1009_v9  ;;  %v1150_v9 = vld [vmem:[%s1937_s19] sm:$0xff] }
 0x545   : > { %1180 = vmatpush.msrb.mxu3 %v1150_v9 }
 0x5af   : > { %v1008_v51 = vpop.xlane.xlu0 %1007 }
 0x5b0   : > { %v1019_v8 = vmul.f32 %v2046_v50, %v1008_v51 }
 0x5b2   : > { %v1021_v52 = vsub.f32 %v2037_v42, %v1019_v8 }
 0x5b4   : > { %v1023_v53 = vmul.f32 %v1021_v52, %v1021_v52 }
 0x5b6   : > { %v1025_v54 = vsel %vm604_vm1, %v1023_v53, 0.0 }
 0x5b7   : > { %v1011_v55 = vpop.xlane.xlu2 %1010  ;;  %1026 = vadd.xlane.f32.xlu1 %v1025_v54 }
 0x5b8   : > { %v1020_v56 = vmul.f32 %v2046_v50, %v1011_v55 }
 0x5ba   : > { %v1022_v57 = vsub.f32 %v2042_v45, %v1020_v56 }
 0x5bc   : > { %v1024_v58 = vmul.f32 %v1022_v57, %v1022_v57 }
 0x5be   : > { %v1028_v59 = vsel %vm604_vm1, %v1024_v58, 0.0 }
 0x5bf   : > { %1029 = vadd.xlane.f32.xlu0 %v1028_v59 }
 0x62a   : > { %v1027_v0 = vpop.xlane.xlu1 %1026 }
 0x62b   : > { %v1031_v1 = vmul.f32 %v1027_v0, %v2046_v50 }
 0x62d   : > { %v1033_v2 = vadd.f32 1e-05, %v1031_v1 }
 0x62f   : > { %1572 = vrsqrt.f32 %v1033_v2  ;;  %vm1041_vm8 = vweird.f32 %v1033_v2 }
 0x632   : > { %v1030_v3 = vpop.xlane.xlu0 %1029 }
 0x633   : > { %v1032_v4 = vmul.f32 %v1030_v3, %v2046_v50 }
 0x635   : > { %v1573_v5 = vpop.eup %1572  ;;  %v1034_v6 = vadd.f32 1e-05, %v1032_v4 }
 0x636   : > { %v1036_v10 = vmul.f32 %v1573_v5, %v1033_v2  ;;  %vm1042_vm7 = vweird.f32 %v1573_v5 }
 0x637   : > { %1574 = vrsqrt.f32 %v1034_v6  ;;  %vm1043_vm9 = vmor %vm1041_vm8, %vm1042_vm7  ;;  %vm1051_vm11 = vweird.f32 %v1034_v6 }
 0x638   : > { %v1037_v12 = vmul.f32 %v1573_v5, %v1036_v10 }
 0x63a   : > { %v1038_v13 = vmul.f32 0.5, %v1037_v12 }
 0x63c   : > { %v1039_v14 = vsub.f32 1.5, %v1038_v13 }
 0x63d   : > { %v1575_v15 = vpop.eup %1574 }
 0x63e   : > { %v1040_v16 = vmul.f32 %v1573_v5, %v1039_v14  ;;  %v1046_v17 = vmul.f32 %v1575_v15, %v1034_v6  ;;  %vm1052_vm10 = vweird.f32 %v1575_v15 }
 0x63f   : > { %vm1053_vm12 = vmor %vm1051_vm11, %vm1052_vm10 }
 0x640   : > { %v1044_v19 = vsel %vm1043_vm9, %v1573_v5, %v1040_v16  ;;  %v1047_v20 = vmul.f32 %v1575_v15, %v1046_v17 }
 0x641   : > { %v1055_v21 = vmul.f32 %v1044_v19, %v1021_v52 }
 0x642   : > { %v1048_v23 = vmul.f32 0.5, %v1047_v20 }
 0x643   : > { %v1060_v24 = vmul.f32 %v1550_v18, %v1055_v21 }
 0x644   : > { %v1049_v25 = vsub.f32 1.5, %v1048_v23 }
 0x645   : > { %v1065_v26 = vadd.f32 %v1551_v22, %v1060_v24 }
 0x646   : > { %v1050_v27 = vmul.f32 %v1575_v15, %v1049_v25 }
 0x647   : > { %1454 = vmatmul.msk.f32.vlgmr.msrb.gmra.mxu1 %vm604_vm1, %v1065_v26 }
 0x648   : > { %v1054_v28 = vsel %vm1053_vm12, %v1575_v15, %v1050_v27 }
 0x649   : > { %v1056_v29 = vmul.f32 %v1054_v28, %v1022_v57 }
 0x64b   : > { %v1061_v30 = vmul.f32 %v1550_v18, %v1056_v29 }
 0x64d   : > { %v1066_v32 = vadd.f32 %v1551_v22, %v1061_v30 }
 0x64f   : > { %1455 = vmatmul.msk.f32.gmra.mxu1 %vm604_vm1, %v1066_v32 }
 0x6c4   : > { %v1094_v33 = vpop.f32.mrf.mxu1 }
 0x6c5   : > { %1142 = vrot.lane.b32.xlu2 %v1094_v33, %s1774_s26  ;;  %v1456_v41 = vmul.f32 -1.442695, %v1094_v33 }
 0x6c7   : > { %1576 = vpow2.f32 %v1456_v41 }
 0x6cc   : > { %v1097_v37 = vpop.f32.mrf.mxu1 }
 0x6cd   : > { %1144 = vrot.lane.b32.xlu1 %v1097_v37, %s1774_s26  ;;  %v1577_v43 = vpop.eup %1576  ;;  %v1457_v48 = vmul.f32 -1.442695, %v1097_v37 }
 0x6ce   : > { %v1106_v44 = vadd.f32 1.0, %v1577_v43 }
 0x6d0   : > { %1578 = vrcp.f32 %v1106_v44  ;;  %v1119_v51 = vand.u32 2147483648, %v1106_v44  ;;  %vm1113_vm14 = vweird.f32 %v1106_v44  ;;  %v1117_v8 = vand.u32 2147483647, %v1106_v44 }
 0x6d1   : > { %1580 = vpow2.f32 %v1457_v48 }
 0x6d2   : > { %v1120_v54 = vor.u32 1.1754944e-38, %v1119_v51  ;;  %vm1118_vm0 = vcmp.eq.f32.partialorder %v1117_v8, 8.507059e+37 }
 0x6d6   : > { %v1579_v11 = vpop.eup %1578 }
 0x6d7   : > { %v1109_v46 = vmul.f32 %v1579_v11, %v1106_v44  ;;  %vm1114_vm13 = vweird.f32 %v1579_v11  ;;  %v1581_v52 = vpop.eup %1580 }
 0x6d8   : > { %vm1115_vm15 = vmor %vm1113_vm14, %vm1114_vm13  ;;  %v1107_v55 = vadd.f32 1.0, %v1581_v52 }
 0x6d9   : > { %v1110_v47 = vsub.f32 1.0, %v1109_v46 }
 0x6da   : > { %1582 = vrcp.f32 %v1107_v55  ;;  %v1134_v1 = vand.u32 2147483648, %v1107_v55  ;;  %vm1128_vm5 = vweird.f32 %v1107_v55  ;;  %v1132_v2 = vand.u32 2147483647, %v1107_v55 }
 0x6db   : > { %v1111_v49 = vmul.f32 %v1579_v11, %v1110_v47 }
 0x6dc   : > { %v1135_v4 = vor.u32 1.1754944e-38, %v1134_v1  ;;  %vm1133_vm3 = vcmp.eq.f32.partialorder %v1132_v2, 8.507059e+37 }
 0x6dd   : > { %v1112_v7 = vadd.f32 %v1579_v11, %v1111_v49 }
 0x6df   : > { %v1116_v53 = vsel %vm1115_vm15, %v1579_v11, %v1112_v7 }
 0x6e0   : > { %v1121_v56 = vsel %vm1118_vm0, %v1120_v54, %v1116_v53  ;;  %v1583_v60 = vpop.eup %1582 }
 0x6e1   : > { %v1138_v57 = vmul.f32 %v1121_v56, %v1094_v33  ;;  %v1124_v61 = vmul.f32 %v1583_v60, %v1107_v55  ;;  %vm1129_vm4 = vweird.f32 %v1583_v60 }
 0x6e2   : > { %vm1130_vm6 = vmor %vm1128_vm5, %vm1129_vm4 }
 0x6e3   : > { %v1125_v62 = vsub.f32 1.0, %v1124_v61 }
 0x6e5   : > { %v1126_v63 = vmul.f32 %v1583_v60, %v1125_v62 }
 0x6e7   : > { %v1127_v0 = vadd.f32 %v1583_v60, %v1126_v63 }
 0x6e9   : > { %v1131_v3 = vsel %vm1130_vm6, %v1583_v60, %v1127_v0 }
 0x6ea   : > { %v1136_v5 = vsel %vm1133_vm3, %v1135_v4, %v1131_v3 }
 0x6eb   : > { %v1139_v6 = vmul.f32 %v1136_v5, %v1097_v37  ;;  %v1552_v37 = vld [vmem:[%s579_s14] ss:$0 sm:$0xff] }
 0x71f   : > { %v1143_v58 = vpop.permute.xlu2 %1142 }
 0x720   : > { %v1148_v59 = vmul.f32 %v1143_v58, %v1138_v57 }
 0x722   : > { %1458 = vmatmul.msk.f32.vlgmr.msrb.gmra.mxu3 %vm1158_vm2, %v1148_v59 }
 0x73f   : > { %v1145_v10 = vpop.permute.xlu1 %1144 }
 0x740   : > { %v1149_v12 = vmul.f32 %v1145_v10, %v1139_v6 }
 0x742   : > { %1459 = vmatmul.msk.f32.gmra.mxu3 %vm1158_vm2, %v1149_v12 }
 0x7a5   : > { %v1182_v13 = vpop.f32.mrf.mxu3 }
 0x7a6   : > { %v1188_v14 = vadd.f32 %v1182_v13, %v2037_v42 }
 0x7a8   : > { %v1192_v15 = vsel %vm604_vm1, %v1188_v14, 0.0 }
 0x7a9   : > { %1193 = vadd.xlane.f32.xlu0 %v1192_v15 }
 0x7c5   : > { %v1185_v16 = vpop.f32.mrf.mxu3 }
 0x7c6   : > { %v1189_v17 = vadd.f32 %v1185_v16, %v2042_v45 }
 0x7c8   : > { %v1195_v18 = vsel %vm604_vm1, %v1189_v17, 0.0 }
 0x7c9   : > { %1196 = vadd.xlane.f32.xlu0 %v1195_v18 }
 0x81c   : > { %v1194_v19 = vpop.xlane.xlu0 %1193 }
 0x81d   : > { %v1198_v20 = vmul.f32 %v1194_v19, %v2046_v50 }
 0x81f   : > { %v1200_v21 = vsub.f32 %v1188_v14, %v1198_v20 }
 0x821   : > { %v1202_v22 = vmul.f32 %v1200_v21, %v1200_v21 }
 0x823   : > { %v1204_v23 = vsel %vm604_vm1, %v1202_v22, 0.0 }
 0x824   : > { %1205 = vadd.xlane.f32.xlu0 %v1204_v23 }
 0x83c   : > { %v1197_v24 = vpop.xlane.xlu0 %1196 }
 0x83d   : > { %v1199_v42 = vmul.f32 %v1197_v24, %v2046_v50 }
 0x83f   : > { %v1201_v25 = vsub.f32 %v1189_v17, %v1199_v42 }
 0x841   : > { %v1203_v26 = vmul.f32 %v1201_v25, %v1201_v25 }
 0x843   : > { %v1207_v27 = vsel %vm604_vm1, %v1203_v26, 0.0 }
 0x844   : > { %1208 = vadd.xlane.f32.xlu2 %v1207_v27 }
 0x897   : > { %v1206_v45 = vpop.xlane.xlu0 %1205 }
 0x898   : > { %v1210_v28 = vmul.f32 %v1206_v45, %v2046_v50 }
 0x89a   : > { %v1212_v29 = vadd.f32 1e-05, %v1210_v28 }
 0x89c   : > { %1584 = vrsqrt.f32 %v1212_v29  ;;  %vm1220_vm8 = vweird.f32 %v1212_v29 }
 0x8a2   : > { %v1585_v30 = vpop.eup %1584 }
 0x8a3   : > { %v1215_v32 = vmul.f32 %v1585_v30, %v1212_v29  ;;  %vm1221_vm7 = vweird.f32 %v1585_v30 }
 0x8a4   : > { %vm1222_vm9 = vmor %vm1220_vm8, %vm1221_vm7 }
 0x8a5   : > { %v1216_v33 = vmul.f32 %v1585_v30, %v1215_v32 }
 0x8a7   : > { %v1217_v31 = vmul.f32 0.5, %v1216_v33 }
 0x8a9   : > { %v1218_v35 = vsub.f32 1.5, %v1217_v31 }
 0x8ab   : > { %v1219_v36 = vmul.f32 %v1585_v30, %v1218_v35 }
 0x8ad   : > { %v1223_v38 = vsel %vm1222_vm9, %v1585_v30, %v1219_v36 }
 0x8ae   : > { %v1234_v39 = vmul.f32 %v1223_v38, %v1200_v21 }
 0x8b0   : > { %v1239_v40 = vmul.f32 %v1552_v37, %v1234_v39 }
 0x8b2   : > { %v1244_v41 = vadd.f32 %v1553_v34, %v1239_v40 }
 0x8b4   : > { %1246 = vst.msk [vmem:[#allocation2] sm:$0xff] %vm604_vm1, %v1244_v41 }
 0x8b7   : > { %v1209_v43 = vpop.xlane.xlu2 %1208 }
 0x8b8   : > { %v1211_v44 = vmul.f32 %v1209_v43, %v2046_v50 }
 0x8ba   : > { %v1213_v9 = vadd.f32 1e-05, %v1211_v44 }
 0x8bc   : > { %1586 = vrsqrt.f32 %v1213_v9  ;;  %vm1230_vm11 = vweird.f32 %v1213_v9 }
 0x8c2   : > { %v1587_v11 = vpop.eup %1586 }
 0x8c3   : > { %v1225_v46 = vmul.f32 %v1587_v11, %v1213_v9  ;;  %vm1231_vm10 = vweird.f32 %v1587_v11 }
 0x8c4   : > { %vm1232_vm12 = vmor %vm1230_vm11, %vm1231_vm10 }
 0x8c5   : > { %v1226_v47 = vmul.f32 %v1587_v11, %v1225_v46 }
 0x8c7   : > { %v1227_v48 = vmul.f32 0.5, %v1226_v47 }
 0x8c9   : > { %v1228_v49 = vsub.f32 1.5, %v1227_v48 }
 0x8cb   : > { %v1229_v7 = vmul.f32 %v1587_v11, %v1228_v49 }
 0x8cd   : > { %v1233_v51 = vsel %vm1232_vm12, %v1587_v11, %v1229_v7 }
 0x8ce   : > { %v1235_v8 = vmul.f32 %v1233_v51, %v1201_v25 }
 0x8d0   : > { %v1240_v52 = vmul.f32 %v1552_v37, %v1235_v8  ;;  %1251 = sbr.rel (%p1460_p8) target bundleno = 2263 (0x8d7), region = 92 }
 0x8d2   : > { %v1245_v53 = vadd.f32 %v1553_v34, %v1240_v52 }
 0x8d4   : > { %1247 = vst.msk [vmem:[#allocation2 + $0x8] sm:$0xff] %vm604_vm1, %v1245_v53 }
 0x8d5   : > { %1252 = vst.msk [vmem:[#allocation11] sm:$0xff] %vm604_vm1, %v1244_v41 }
 0x8d6   : > { %1253 = vst.msk [vmem:[#allocation11 + $0x8] sm:$0xff] %vm604_vm1, %v1245_v53 }
 0x8d7 PF: > { %p1510_p9 = scmp.eq.s32.totalorder %s1851_s22, 1  ;;  %s1778_s0 = smov [#allocation11]  }
 0x8d8   : > { %s1259_s14 = sshll.u32 %s1778_s0, 4  ;;  %s1261_s30 = sshll.u32 %s2129_s12, 4  ;;  %s1260_s14 = int_to_ptr.vmem [resolvable:$true] %s1259_s14  ;;  %s1262_s30 = int_to_ptr.hbm [resolvable:$true] %s1261_s30 }
 0x8d9   : > { %s1779_s15 = smov 128  }
 0x8da   : > { %1486 = dma.vmem_to_hbm [thread:$0]  (%p1510_p9), %s1260_s14, 256, %s1262_s30, [#allocation5], %s1779_s15, %s1779_s15, %s1769_s13  }
 0x8db   : > { %1753 = dma.done.wait (%p1510_p9), [#allocation5], 256  }
 0x8dc   : > { %1755 = vsyncadd (%p1510_p9), [#allocation5], 4294967040 }
 0x8dd PF: > { %s26_s21 = sadd.s32 1, %s1758_s21  }
 0x8de   : > { %p23_p10 = scmp.ge.s32.totalorder %s26_s21, 4  }
 0x8e0   :  { %25 = sbr.rel (!%p23_p10) target bundleno = 8 (0x8), region = 141 }
 0x8e5   :  { %1278 = vsyncpa [#allocation4], 1 }
 0x8e6   :  { %1280 = vsyncpa [#allocation4 + $0x1], 1 }
 0x8e7   :  { %1281 = vsyncpa [#allocation7], 1 }
 0x8e8   :  { %1282 = vsyncpa [#allocation10], 1 }
 0x8e9   :  { %1283 = vsyncpa [#allocation5], 1 }
 0x8ea   :  { %1285 = vsyncpa [#allocation5 + $0x1], 1 }

</bundles_post_ra>
